<compile_context>
chip_gen: v7x
topology: tpu7x:2x2x1
jax: 0.10.0
libtpu: 0.0.40
codegen_flags: <defaults>
</compile_context>

<pallas_src>
import functools

import jax
import jax.numpy as jnp
from jax import lax
from jax.experimental import pallas as pl
from jax.experimental.pallas import tpu as pltpu


def _basic_block_kernel(masks_ref, x_ref, w1_ref, s1_ref, b1_ref,
                        w2_ref, s2_ref, b2_ref, out_ref, *, H, W):
    """One batch element per grid step; all data is channels-major (C, H*W)."""
    HW = H * W
    x = x_ref[0].astype(jnp.float32)                       # (Cin, HW), lane-dense

    # Flat-index offsets of the nine (dh, dw) taps and their validity masks.
    offsets = [dh * W + dw for dh in (-1, 0, 1) for dw in (-1, 0, 1)]
    masks = [masks_ref[pl.ds(t, 1), :] for t in range(9)]  # each (1, HW), 0/1

    def conv3x3(inp, w_cm):
        # inp: (C, HW); w_cm: (Cout, 9*C), tap-major / channel-minor ordering.
        taps = []
        for t, d in enumerate(offsets):
            if d == 0:
                taps.append(inp)                           # center tap: no shift, no mask
            else:
                shifted = pltpu.roll(inp, shift=(-d) % HW, axis=1)   # XLU lane rotate
                taps.append(shifted * masks[t])            # zero out wrapped border pixels
        patches = jnp.concatenate(taps, axis=0)            # (9*C, HW), sublane-aligned concat
        # Single MXU matmul per conv (K = 9*C), lane-dense (Cout, HW) result.
        return jnp.dot(w_cm, patches, preferred_element_type=jnp.float32)

    # conv1 -> bn1 -> relu   (kept in registers; no scratch round-trip)
    mid = conv3x3(x, w1_ref[...].astype(jnp.float32))
    mid = jnp.maximum(mid * s1_ref[...] + b1_ref[...], 0.0)          # (Cout, HW)

    # conv2 -> bn2 -> + residual -> relu
    out = conv3x3(mid, w2_ref[...].astype(jnp.float32))
    out = out * s2_ref[...] + b2_ref[...] + x                        # residual = x tile
    out_ref[0] = jnp.maximum(out, 0.0).astype(out_ref.dtype)         # lane-dense store


def basic_block_forward(x_nchw, w1, g1, be1, m1, v1, w2, g2, be2, m2, v2,
                        eps=1e-5):
    """x: (N, C, H, W) NCHW; w1/w2: (Cout, Cin, 3, 3) OIHW; BN params: (C,)."""
    N, Cin, H, W = x_nchw.shape
    Cout = w1.shape[0]
    assert Cin == Cout, "residual add requires inplanes == planes (stride=1)"
    HW = H * W
    f32 = jnp.float32

    # Fold BatchNorm (inference) into per-channel scale / bias.
    s1 = (g1 / jnp.sqrt(v1 + eps)).astype(f32)
    b1 = (be1 - m1 * s1).astype(f32)
    s2 = (g2 / jnp.sqrt(v2 + eps)).astype(f32)
    b2 = (be2 - m2 * s2).astype(f32)

    # Channels-major, spatially-flattened views (zero-cost reshape of NCHW).
    x_cm = x_nchw.reshape(N, Cin, HW)
    # (Cout, 9*Cin): tap-major (kh, kw), channel-minor -- matches kernel tap order.
    w1_cm = jnp.transpose(w1, (0, 2, 3, 1)).reshape(Cout, 9 * Cin).astype(f32)
    w2_cm = jnp.transpose(w2, (0, 2, 3, 1)).reshape(Cout, 9 * Cout).astype(f32)

    # 0/1 validity masks for the nine (dh, dw) taps on the flattened spatial axis.
    hh = jnp.arange(H)[:, None]
    ww = jnp.arange(W)[None, :]
    rows = []
    for dh in (-1, 0, 1):
        for dw in (-1, 0, 1):
            ok = ((hh + dh >= 0) & (hh + dh < H) &
                  (ww + dw >= 0) & (ww + dw < W))
            rows.append(ok.reshape(HW))
    masks = jnp.stack(rows).astype(f32)                               # (9, HW)

    kernel = functools.partial(_basic_block_kernel, H=H, W=W)

    out = pl.pallas_call(
        kernel,
        out_shape=jax.ShapeDtypeStruct((N, Cout, HW), x_nchw.dtype),
        grid_spec=pltpu.PrefetchScalarGridSpec(
            num_scalar_prefetch=0,
            grid=(N,),
            in_specs=[
                pl.BlockSpec((9, HW), lambda n: (0, 0)),              # tap masks
                pl.BlockSpec((1, Cin, HW), lambda n: (n, 0, 0)),      # x (channels-major)
                pl.BlockSpec((Cout, 9 * Cin), lambda n: (0, 0)),      # w1
                pl.BlockSpec((Cout, 1), lambda n: (0, 0)),            # bn1 scale
                pl.BlockSpec((Cout, 1), lambda n: (0, 0)),            # bn1 bias
                pl.BlockSpec((Cout, 9 * Cout), lambda n: (0, 0)),     # w2
                pl.BlockSpec((Cout, 1), lambda n: (0, 0)),            # bn2 scale
                pl.BlockSpec((Cout, 1), lambda n: (0, 0)),            # bn2 bias
            ],
            out_specs=pl.BlockSpec((1, Cout, HW), lambda n: (n, 0, 0)),
        ),
        compiler_params=pltpu.CompilerParams(
            dimension_semantics=("parallel",)),
    )(masks, x_cm, w1_cm, s1.reshape(Cout, 1), b1.reshape(Cout, 1),
      w2_cm, s2.reshape(Cout, 1), b2.reshape(Cout, 1))

    return out.reshape(N, Cout, H, W)


def _reference(x, w1, g1, be1, m1, v1, w2, g2, be2, m2, v2, eps=1e-5):
    dn = ('NCHW', 'OIHW', 'NCHW')

    def bn(y, g, b, m, v):
        inv = g / jnp.sqrt(v + eps)
        return y * inv.reshape(1, -1, 1, 1) + (b - m * inv).reshape(1, -1, 1, 1)

    out = lax.conv_general_dilated(x, w1, (1, 1), ((1, 1), (1, 1)),
                                   dimension_numbers=dn)
    out = jnp.maximum(bn(out, g1, be1, m1, v1), 0.0)
    out = lax.conv_general_dilated(out, w2, (1, 1), ((1, 1), (1, 1)),
                                   dimension_numbers=dn)
    out = bn(out, g2, be2, m2, v2) + x
    return jnp.maximum(out, 0.0)


if __name__ == "__main__":
    N, C, H, W = 2, 8, 16, 16   # inplanes = planes = 8, stride = 1, dilation = 1

    key = jax.random.PRNGKey(0)
    kx, kw1, kw2, kg1, kb1, kg2, kb2, km1, kv1, km2, kv2 = jax.random.split(key, 11)

    x = jax.random.normal(kx, (N, C, H, W), jnp.float32)
    w1 = jax.random.normal(kw1, (C, C, 3, 3), jnp.float32) * 0.1
    w2 = jax.random.normal(kw2, (C, C, 3, 3), jnp.float32) * 0.1
    g1 = 1.0 + 0.1 * jax.random.normal(kg1, (C,), jnp.float32)
    be1 = 0.1 * jax.random.normal(kb1, (C,), jnp.float32)
    g2 = 1.0 + 0.1 * jax.random.normal(kg2, (C,), jnp.float32)
    be2 = 0.1 * jax.random.normal(kb2, (C,), jnp.float32)
    m1 = 0.05 * jax.random.normal(km1, (C,), jnp.float32)
    v1 = 1.0 + 0.1 * jnp.abs(jax.random.normal(kv1, (C,), jnp.float32))
    m2 = 0.05 * jax.random.normal(km2, (C,), jnp.float32)
    v2 = 1.0 + 0.1 * jnp.abs(jax.random.normal(kv2, (C,), jnp.float32))

    out = basic_block_forward(x, w1, g1, be1, m1, v1, w2, g2, be2, m2, v2)
    out = jax.block_until_ready(out)

    ref = _reference(x, w1, g1, be1, m1, v1, w2, g2, be2, m2, v2)
    assert out.shape == (N, C, H, W)
    err = float(jnp.max(jnp.abs(out - ref)))
    assert err < 1e-3, f"mismatch vs reference conv: max abs err = {err}"

    print("KERNEL_OK")
</pallas_src>

<mosaic_0001>
module attributes {stable_mosaic.version = 11 : i64} {
  func.func @_basic_block_kernel(%arg0: i32, %arg1: memref<9x256xf32, #tpu.memory_space<vmem>>, %arg2: memref<1x8x256xf32, #tpu.memory_space<vmem>>, %arg3: memref<8x72xf32, #tpu.memory_space<vmem>>, %arg4: memref<8x1xf32, #tpu.memory_space<vmem>>, %arg5: memref<8x1xf32, #tpu.memory_space<vmem>>, %arg6: memref<8x72xf32, #tpu.memory_space<vmem>>, %arg7: memref<8x1xf32, #tpu.memory_space<vmem>>, %arg8: memref<8x1xf32, #tpu.memory_space<vmem>>, %arg9: memref<1x8x256xf32, #tpu.memory_space<vmem>>) attributes {dimension_semantics = [#tpu.dimension_semantics<parallel>], iteration_bounds = array<i64: 2>, scalar_prefetch = 0 : i64, scratch_operands = 0 : i64, tpu.core_type = #tpu.core_type<tc>, window_params = [{pipeline_mode = #tpu.pipeline_mode<synchronous>, transform_indices = @transform_0, window_bounds = array<i64: 9, 256>}, {transform_indices = @transform_1, window_bounds = array<i64: 1, 8, 256>}, {pipeline_mode = #tpu.pipeline_mode<synchronous>, transform_indices = @transform_2, window_bounds = array<i64: 8, 72>}, {pipeline_mode = #tpu.pipeline_mode<synchronous>, transform_indices = @transform_3, window_bounds = array<i64: 8, 1>}, {pipeline_mode = #tpu.pipeline_mode<synchronous>, transform_indices = @transform_4, window_bounds = array<i64: 8, 1>}, {pipeline_mode = #tpu.pipeline_mode<synchronous>, transform_indices = @transform_5, window_bounds = array<i64: 8, 72>}, {pipeline_mode = #tpu.pipeline_mode<synchronous>, transform_indices = @transform_6, window_bounds = array<i64: 8, 1>}, {pipeline_mode = #tpu.pipeline_mode<synchronous>, transform_indices = @transform_7, window_bounds = array<i64: 8, 1>}, {transform_indices = @transform_8, window_bounds = array<i64: 1, 8, 256>}]} {
    %c0 = arith.constant 0 : index
    %c0_0 = arith.constant 0 : index
    %c0_1 = arith.constant 0 : index
    %0 = vector.load %arg2[%c0, %c0_0, %c0_1] : memref<1x8x256xf32, #tpu.memory_space<vmem>>, vector<1x8x256xf32>
    %1 = vector.shape_cast %0 : vector<1x8x256xf32> to vector<8x256xf32>
    %c0_2 = arith.constant 0 : index
    %c0_3 = arith.constant 0 : index
    %2 = vector.load %arg1[%c0_2, %c0_3] : memref<9x256xf32, #tpu.memory_space<vmem>>, vector<1x256xf32>
    %c1 = arith.constant 1 : index
    %c0_4 = arith.constant 0 : index
    %3 = vector.load %arg1[%c1, %c0_4] : memref<9x256xf32, #tpu.memory_space<vmem>>, vector<1x256xf32>
    %c2 = arith.constant 2 : index
    %c0_5 = arith.constant 0 : index
    %4 = vector.load %arg1[%c2, %c0_5] : memref<9x256xf32, #tpu.memory_space<vmem>>, vector<1x256xf32>
    %c3 = arith.constant 3 : index
    %c0_6 = arith.constant 0 : index
    %5 = vector.load %arg1[%c3, %c0_6] : memref<9x256xf32, #tpu.memory_space<vmem>>, vector<1x256xf32>
    %c5 = arith.constant 5 : index
    %c0_7 = arith.constant 0 : index
    %6 = vector.load %arg1[%c5, %c0_7] : memref<9x256xf32, #tpu.memory_space<vmem>>, vector<1x256xf32>
    %c6 = arith.constant 6 : index
    %c0_8 = arith.constant 0 : index
    %7 = vector.load %arg1[%c6, %c0_8] : memref<9x256xf32, #tpu.memory_space<vmem>>, vector<1x256xf32>
    %c7 = arith.constant 7 : index
    %c0_9 = arith.constant 0 : index
    %8 = vector.load %arg1[%c7, %c0_9] : memref<9x256xf32, #tpu.memory_space<vmem>>, vector<1x256xf32>
    %c8 = arith.constant 8 : index
    %c0_10 = arith.constant 0 : index
    %9 = vector.load %arg1[%c8, %c0_10] : memref<9x256xf32, #tpu.memory_space<vmem>>, vector<1x256xf32>
    %c0_11 = arith.constant 0 : index
    %c0_12 = arith.constant 0 : index
    %10 = vector.load %arg3[%c0_11, %c0_12] : memref<8x72xf32, #tpu.memory_space<vmem>>, vector<8x72xf32>
    %c17_i32 = arith.constant 17 : i32
    %11 = tpu.dynamic_rotate %1 by %c17_i32 dim 1 : vector<8x256xf32>, i32 -> vector<8x256xf32>
    %12 = vector.broadcast %2 : vector<1x256xf32> to vector<8x256xf32>
    %13 = arith.mulf %11, %12 : vector<8x256xf32>
    %c16_i32 = arith.constant 16 : i32
    %14 = tpu.dynamic_rotate %1 by %c16_i32 dim 1 : vector<8x256xf32>, i32 -> vector<8x256xf32>
    %15 = vector.broadcast %3 : vector<1x256xf32> to vector<8x256xf32>
    %16 = arith.mulf %14, %15 : vector<8x256xf32>
    %c15_i32 = arith.constant 15 : i32
    %17 = tpu.dynamic_rotate %1 by %c15_i32 dim 1 : vector<8x256xf32>, i32 -> vector<8x256xf32>
    %18 = vector.broadcast %4 : vector<1x256xf32> to vector<8x256xf32>
    %19 = arith.mulf %17, %18 : vector<8x256xf32>
    %c1_i32 = arith.constant 1 : i32
    %20 = tpu.dynamic_rotate %1 by %c1_i32 dim 1 : vector<8x256xf32>, i32 -> vector<8x256xf32>
    %21 = vector.broadcast %5 : vector<1x256xf32> to vector<8x256xf32>
    %22 = arith.mulf %20, %21 : vector<8x256xf32>
    %c255_i32 = arith.constant 255 : i32
    %23 = tpu.dynamic_rotate %1 by %c255_i32 dim 1 : vector<8x256xf32>, i32 -> vector<8x256xf32>
    %24 = vector.broadcast %6 : vector<1x256xf32> to vector<8x256xf32>
    %25 = arith.mulf %23, %24 : vector<8x256xf32>
    %c241_i32 = arith.constant 241 : i32
    %26 = tpu.dynamic_rotate %1 by %c241_i32 dim 1 : vector<8x256xf32>, i32 -> vector<8x256xf32>
    %27 = vector.broadcast %7 : vector<1x256xf32> to vector<8x256xf32>
    %28 = arith.mulf %26, %27 : vector<8x256xf32>
    %c240_i32 = arith.constant 240 : i32
    %29 = tpu.dynamic_rotate %1 by %c240_i32 dim 1 : vector<8x256xf32>, i32 -> vector<8x256xf32>
    %30 = vector.broadcast %8 : vector<1x256xf32> to vector<8x256xf32>
    %31 = arith.mulf %29, %30 : vector<8x256xf32>
    %c239_i32 = arith.constant 239 : i32
    %32 = tpu.dynamic_rotate %1 by %c239_i32 dim 1 : vector<8x256xf32>, i32 -> vector<8x256xf32>
    %33 = vector.broadcast %9 : vector<1x256xf32> to vector<8x256xf32>
    %34 = arith.mulf %32, %33 : vector<8x256xf32>
    %35 = tpu.concatenate %13, %16, %19, %22, %1, %25, %28, %31, %34 in 0 : vector<8x256xf32>, vector<8x256xf32>, vector<8x256xf32>, vector<8x256xf32>, vector<8x256xf32>, vector<8x256xf32>, vector<8x256xf32>, vector<8x256xf32>, vector<8x256xf32> -> vector<72x256xf32>
    %cst = arith.constant dense<0.000000e+00> : vector<8x256xf32>
    %36 = tpu.matmul %10, %35, %cst {dimension_numbers = #tpu.dot_dimension_numbers<[1], [0], [0], [1], [0, 0, 1, 1], [], []>} : vector<8x72xf32>, vector<72x256xf32>, vector<8x256xf32> -> vector<8x256xf32>
    %c0_13 = arith.constant 0 : index
    %c0_14 = arith.constant 0 : index
    %37 = vector.load %arg4[%c0_13, %c0_14] : memref<8x1xf32, #tpu.memory_space<vmem>>, vector<8x1xf32>
    %38 = vector.broadcast %37 : vector<8x1xf32> to vector<8x256xf32>
    %39 = arith.mulf %36, %38 : vector<8x256xf32>
    %c0_15 = arith.constant 0 : index
    %c0_16 = arith.constant 0 : index
    %40 = vector.load %arg5[%c0_15, %c0_16] : memref<8x1xf32, #tpu.memory_space<vmem>>, vector<8x1xf32>
    %41 = vector.broadcast %40 : vector<8x1xf32> to vector<8x256xf32>
    %42 = arith.addf %39, %41 : vector<8x256xf32>
    %cst_17 = arith.constant 0.000000e+00 : f32
    %43 = vector.broadcast %cst_17 : f32 to vector<8x256xf32>
    %44 = arith.maximumf %42, %43 : vector<8x256xf32>
    %c0_18 = arith.constant 0 : index
    %c0_19 = arith.constant 0 : index
    %45 = vector.load %arg6[%c0_18, %c0_19] : memref<8x72xf32, #tpu.memory_space<vmem>>, vector<8x72xf32>
    %c17_i32_20 = arith.constant 17 : i32
    %46 = tpu.dynamic_rotate %44 by %c17_i32_20 dim 1 : vector<8x256xf32>, i32 -> vector<8x256xf32>
    %47 = vector.broadcast %2 : vector<1x256xf32> to vector<8x256xf32>
    %48 = arith.mulf %46, %47 : vector<8x256xf32>
    %c16_i32_21 = arith.constant 16 : i32
    %49 = tpu.dynamic_rotate %44 by %c16_i32_21 dim 1 : vector<8x256xf32>, i32 -> vector<8x256xf32>
    %50 = vector.broadcast %3 : vector<1x256xf32> to vector<8x256xf32>
    %51 = arith.mulf %49, %50 : vector<8x256xf32>
    %c15_i32_22 = arith.constant 15 : i32
    %52 = tpu.dynamic_rotate %44 by %c15_i32_22 dim 1 : vector<8x256xf32>, i32 -> vector<8x256xf32>
    %53 = vector.broadcast %4 : vector<1x256xf32> to vector<8x256xf32>
    %54 = arith.mulf %52, %53 : vector<8x256xf32>
    %c1_i32_23 = arith.constant 1 : i32
    %55 = tpu.dynamic_rotate %44 by %c1_i32_23 dim 1 : vector<8x256xf32>, i32 -> vector<8x256xf32>
    %56 = vector.broadcast %5 : vector<1x256xf32> to vector<8x256xf32>
    %57 = arith.mulf %55, %56 : vector<8x256xf32>
    %c255_i32_24 = arith.constant 255 : i32
    %58 = tpu.dynamic_rotate %44 by %c255_i32_24 dim 1 : vector<8x256xf32>, i32 -> vector<8x256xf32>
    %59 = vector.broadcast %6 : vector<1x256xf32> to vector<8x256xf32>
    %60 = arith.mulf %58, %59 : vector<8x256xf32>
    %c241_i32_25 = arith.constant 241 : i32
    %61 = tpu.dynamic_rotate %44 by %c241_i32_25 dim 1 : vector<8x256xf32>, i32 -> vector<8x256xf32>
    %62 = vector.broadcast %7 : vector<1x256xf32> to vector<8x256xf32>
    %63 = arith.mulf %61, %62 : vector<8x256xf32>
    %c240_i32_26 = arith.constant 240 : i32
    %64 = tpu.dynamic_rotate %44 by %c240_i32_26 dim 1 : vector<8x256xf32>, i32 -> vector<8x256xf32>
    %65 = vector.broadcast %8 : vector<1x256xf32> to vector<8x256xf32>
    %66 = arith.mulf %64, %65 : vector<8x256xf32>
    %c239_i32_27 = arith.constant 239 : i32
    %67 = tpu.dynamic_rotate %44 by %c239_i32_27 dim 1 : vector<8x256xf32>, i32 -> vector<8x256xf32>
    %68 = vector.broadcast %9 : vector<1x256xf32> to vector<8x256xf32>
    %69 = arith.mulf %67, %68 : vector<8x256xf32>
    %70 = tpu.concatenate %48, %51, %54, %57, %44, %60, %63, %66, %69 in 0 : vector<8x256xf32>, vector<8x256xf32>, vector<8x256xf32>, vector<8x256xf32>, vector<8x256xf32>, vector<8x256xf32>, vector<8x256xf32>, vector<8x256xf32>, vector<8x256xf32> -> vector<72x256xf32>
    %cst_28 = arith.constant dense<0.000000e+00> : vector<8x256xf32>
    %71 = tpu.matmul %45, %70, %cst_28 {dimension_numbers = #tpu.dot_dimension_numbers<[1], [0], [0], [1], [0, 0, 1, 1], [], []>} : vector<8x72xf32>, vector<72x256xf32>, vector<8x256xf32> -> vector<8x256xf32>
    %c0_29 = arith.constant 0 : index
    %c0_30 = arith.constant 0 : index
    %72 = vector.load %arg7[%c0_29, %c0_30] : memref<8x1xf32, #tpu.memory_space<vmem>>, vector<8x1xf32>
    %73 = vector.broadcast %72 : vector<8x1xf32> to vector<8x256xf32>
    %74 = arith.mulf %71, %73 : vector<8x256xf32>
    %c0_31 = arith.constant 0 : index
    %c0_32 = arith.constant 0 : index
    %75 = vector.load %arg8[%c0_31, %c0_32] : memref<8x1xf32, #tpu.memory_space<vmem>>, vector<8x1xf32>
    %76 = vector.broadcast %75 : vector<8x1xf32> to vector<8x256xf32>
    %77 = arith.addf %74, %76 : vector<8x256xf32>
    %78 = arith.addf %77, %1 : vector<8x256xf32>
    %cst_33 = arith.constant 0.000000e+00 : f32
    %79 = vector.broadcast %cst_33 : f32 to vector<8x256xf32>
    %80 = arith.maximumf %78, %79 : vector<8x256xf32>
    %c0_34 = arith.constant 0 : index
    %c0_35 = arith.constant 0 : index
    %c0_36 = arith.constant 0 : index
    %81 = vector.load %arg9[%c0_34, %c0_35, %c0_36] : memref<1x8x256xf32, #tpu.memory_space<vmem>>, vector<1x8x256xf32>
    %82 = vector.shape_cast %81 : vector<1x8x256xf32> to vector<8x256xf32>
    %83 = vector.shape_cast %80 : vector<8x256xf32> to vector<1x8x256xf32>
    tpu.vector_store %arg9[%c0_34, %c0_35, %c0_36], %83 {strides = array<i32>} : memref<1x8x256xf32, #tpu.memory_space<vmem>>, vector<1x8x256xf32>,
    return
  }
  func.func @transform_0(%arg0: i32) -> (i32, i32) {
    %c0_i32 = arith.constant 0 : i32
    %c0_i32_0 = arith.constant 0 : i32
    %c0_i32_1 = arith.constant 0 : i32
    return %c0_i32, %c0_i32_0 : i32, i32
  }
  func.func @transform_1(%arg0: i32) -> (i32, i32, i32) {
    %c0_i32 = arith.constant 0 : i32
    %c0_i32_0 = arith.constant 0 : i32
    %c0_i32_1 = arith.constant 0 : i32
    return %arg0, %c0_i32, %c0_i32_0 : i32, i32, i32
  }
  func.func @transform_2(%arg0: i32) -> (i32, i32) {
    %c0_i32 = arith.constant 0 : i32
    %c0_i32_0 = arith.constant 0 : i32
    %c0_i32_1 = arith.constant 0 : i32
    return %c0_i32, %c0_i32_0 : i32, i32
  }
  func.func @transform_3(%arg0: i32) -> (i32, i32) {
    %c0_i32 = arith.constant 0 : i32
    %c0_i32_0 = arith.constant 0 : i32
    %c0_i32_1 = arith.constant 0 : i32
    return %c0_i32, %c0_i32_0 : i32, i32
  }
  func.func @transform_4(%arg0: i32) -> (i32, i32) {
    %c0_i32 = arith.constant 0 : i32
    %c0_i32_0 = arith.constant 0 : i32
    %c0_i32_1 = arith.constant 0 : i32
    return %c0_i32, %c0_i32_0 : i32, i32
  }
  func.func @transform_5(%arg0: i32) -> (i32, i32) {
    %c0_i32 = arith.constant 0 : i32
    %c0_i32_0 = arith.constant 0 : i32
    %c0_i32_1 = arith.constant 0 : i32
    return %c0_i32, %c0_i32_0 : i32, i32
  }
  func.func @transform_6(%arg0: i32) -> (i32, i32) {
    %c0_i32 = arith.constant 0 : i32
    %c0_i32_0 = arith.constant 0 : i32
    %c0_i32_1 = arith.constant 0 : i32
    return %c0_i32, %c0_i32_0 : i32, i32
  }
  func.func @transform_7(%arg0: i32) -> (i32, i32) {
    %c0_i32 = arith.constant 0 : i32
    %c0_i32_0 = arith.constant 0 : i32
    %c0_i32_1 = arith.constant 0 : i32
    return %c0_i32, %c0_i32_0 : i32, i32
  }
  func.func @transform_8(%arg0: i32) -> (i32, i32, i32) {
    %c0_i32 = arith.constant 0 : i32
    %c0_i32_0 = arith.constant 0 : i32
    %c0_i32_1 = arith.constant 0 : i32
    return %arg0, %c0_i32, %c0_i32_0 : i32, i32, i32
  }
}

</mosaic_0001>

<bundles_post_ra>
// kernel: tpu_custom_call.1
= control target key start
LH: loop header
LB: loop body
LE: loop exit
PB: predicated region body
PF: predicated region fallthrough
CT: control target
= control target key end

     0   :  { %13 = vsyncpa [#allocation3], 0  ;;  %s1556_s0 = inlined_call_operand.vmem [shape: f32[9,256], index: 0, kind: input, shape index: {}]   ;;  %s1557_s1 = inlined_call_operand.hbm [shape: f32[2,8,256], index: 1, kind: input, shape index: {}]   ;;  %s1558_s2 = inlined_call_operand.vmem [shape: f32[8,72], index: 2, kind: input, shape index: {}]   ;;  %s1559_s3 = inlined_call_operand.vmem [shape: f32[8,1], index: 3, kind: input, shape index: {}]   ;;  %s1560_s4 = inlined_call_operand.vmem [shape: f32[8,1], index: 4, kind: input, shape index: {}]   ;;  %s1561_s5 = inlined_call_operand.vmem [shape: f32[8,72], index: 5, kind: input, shape index: {}]   ;;  %s1562_s6 = inlined_call_operand.vmem [shape: f32[8,1], index: 6, kind: input, shape index: {}]   ;;  %s1563_s7 = inlined_call_operand.vmem [shape: f32[8,1], index: 7, kind: input, shape index: {}]   ;;  %s1564_s8 = inlined_call_operand.hbm [shape: f32[2,8,256], index: 8, kind: output, shape index: {}]  }
   0x1   :  { %15 = vsyncpa [#allocation3 + $0x1], 0 }
   0x2   :  { %16 = vsyncpa [#allocation4], 0 }
   0x3   :  { %18 = vsyncpa [#allocation4 + $0x1], 0  ;;  %s1111_s27 = smov 0   ;;  %s1113_s28 = smov 0  }
   0x4   :  { %s1115_s29 = smov 0   ;;  %s1117_s30 = smov 0  }
   0x5 LB: > { %s1132_s9 = sadd.s32 4294967295, %s1052_s30   ;;  %s841_s10 = sadd.s32 4294967294, %s1052_s30   ;;  %s1052_s30 = sphi %s1117_s30, %s1587_s30   ;;  %s1048_s29 = sphi %s1115_s29, %s1586_s29   ;;  %s1044_s28 = sphi %s1113_s28, %s1585_s28   ;;  %s1040_s27 = sphi %s1111_s27, %s1584_s27  }
   0x6   : > { %s1136_s11 = sadd.s32 1, %s1052_s30   ;;  %s52_s12 = sadd.s32 1, %s1048_s29 }
   0x7   : > { %s49_s13 = ssub.s32 %s1052_s30, %s1136_s11  ;;  %p59_p0 = scmp.ne.s32.totalorder %s1048_s29, %s1044_s28 }
   0x8   : > { %p50_p1 = scmp.eq.s32.totalorder %s49_s13, 0  ;;  %p60_p2 = scmp.eq.s32.totalorder %s1052_s30, 0 }
   0x9   : > { %p65_p3 = scmp.ne.s32.totalorder %s1044_s28, %s1040_s27  ;;  %p66_p4 = scmp.eq.s32.totalorder %s1132_s9, 0 }
   0xa   : > { %s1148_s14 = scalar_select %p50_p1, %s1048_s29, %s52_s12  }
   0xb   : > { %p1150_p5 = por %p60_p2, %p59_p0  ;;  %p1154_p6 = por %p66_p4, %p65_p3 }
   0xc   : > { %p215_p7 = scmp.eq.s32.totalorder %s1132_s9, 1  ;;  %p221_p8 = scmp.eq.s32.totalorder %s841_s10, 1 }
   0xd   : > { %p910_p10 = scmp.lt.s32.totalorder %s1052_s30, 2  ;;  %s262_s19 = sand.u32 1, %s1048_s29  }
   0xe   : > { %p1161_p11 = por %p215_p7, %p59_p0  ;;  %p1165_p12 = por %p221_p8, %p65_p3 }
   0xf   : > { %s864_s20 = sshll.u32 %s1052_s30, 8  ;;  %s844_s21 = sshll.u32 %s262_s19, 4 }
  0x10   : > { %s1573_s17 = scalar_select %p1161_p11, 1, 0 }
  0x11   : > { %s1574_s18 = scalar_select %p1165_p12, 1, 0 }
  0x12   : > { %s1174_s24 = scalar_lea.hbm %s1557_s1, %s864_s20  ;;  %s266_s25 = scalar_lea.vmem [#allocation2], %s844_s21 }
  0x13   : > { %s274_s26 = sshll.u32 %s266_s25, 4  ;;  %p1178_p13 = pnand %p910_p10, %p1150_p5  ;;  %s1182_s26 = int_to_ptr.vmem [resolvable:$true] %s274_s26 }
  0x14   : > { %s263_s12 = scalar_lea.sflag [#allocation3], %s262_s19  ;;  %s956_s13 = scalar_lea.hbm %s1174_s24, 256 }
  0x15   : > { %p957_p2 = scmp.ne.s32.totalorder %s1174_s24, %s956_s13  ;;  %p958_p3 = pneg %p1178_p13 }
  0x16   : > { %s961_s21 = scalar_lea.hbm %s1557_s1, 512  ;;  %p962_p5 = scmp.lt.u32.totalorder %s1174_s24, %s1557_s1 }
  0x17   : > { %p959_p4 = pnand %p958_p3, %p957_p2  ;;  %p963_p8 = scmp.lt.u32.totalorder %s961_s21, %s956_s13 }
  0x18   : > { %p965_p9 = scmp.lt.u32.totalorder %s956_s13, %s1174_s24 }
  0x19   : > { %p960_p7 = pneg %p959_p4  ;;  %p964_p10 = por %p963_p8, %p962_p5 }
  0x1b   : > { %p966_p0 = por %p965_p9, %p964_p10 }
  0x1d   : > { %p967_p1 = pnand %p966_p0, %p960_p7 }
  0x1f   : > { %970 = shalt.err (!%p967_p1)
}
  0x20   : > { %s971_s19 = scalar_lea.vmem %s1182_s26, 256  ;;  %s1054_s25 = smov [#allocation2]  }
  0x21   : > { %p972_p2 = scmp.ne.s32.totalorder %s1182_s26, %s971_s19  ;;  %s976_s15 = sshll.u32 %s1054_s25, 4  ;;  %s977_s15 = int_to_ptr.vmem [resolvable:$false] %s976_s15 }
  0x22   : > { %s978_s20 = scalar_lea.vmem %s977_s15, 512  ;;  %p979_p11 = scmp.lt.s32.totalorder %s1182_s26, %s977_s15 }
  0x23   : > { %p974_p4 = pnand %p972_p2, %p958_p3  ;;  %p980_p5 = scmp.lt.s32.totalorder %s978_s20, %s971_s19 }
  0x25   : > { %p975_p12 = pneg %p974_p4  ;;  %p981_p8 = por %p980_p5, %p979_p11 }
  0x27   : > { %p982_p9 = pnand %p981_p8, %p975_p12 }
  0x29   : > { %985 = shalt.err (!%p982_p9)
}
  0x2a   : > { %905 = dma.hbm_to_vmem [thread:$0]  (!%p1178_p13), %s1174_s24, 256, %s1182_s26, %s263_s12  }
  0x2b   : > { %p1576_p0 = scmp.lt.s32.totalorder %s1052_s30, 3  ;;  %p1577_p1 = scmp.ge.s32.totalorder %s1052_s30, 1 }
  0x2d   : > { %p280_p3 = pnand %p1577_p1, %p1576_p0 }
  0x2e   : > { %s1216_s13 = sand.u32 (!%p280_p3), 1, %s1044_s28  }
  0x2f   : > { %283 = sbr.rel (%p280_p3) target bundleno = 810 (0x32a), region = 52  ;;  %s1566_s21 = sshll.u32 (!%p280_p3), %s1216_s13, 4 }
  0x30   : > { %s286_s22 = scalar_lea.sflag (!%p280_p3), [#allocation3], %s1216_s13  ;;  %s289_s10 = scalar_lea.vmem (!%p280_p3), [#allocation2], %s1566_s21 }
  0x36   : > { %1031 = dma.done.wait (%p1154_p6), %s286_s22, 256  }
  0x37   : > { %1033 = vsyncadd (%p1154_p6), %s286_s22, 4294967040  ;;  %v1226_v0 = vld [vmem:[%s289_s10] sm:$0xff]  ;;  %s1055_s24 = smov 16   ;;  %s1056_s26 = smov 17   ;;  %v1232_v1 = vld [vmem:[%s289_s10 + $0x8] sm:$0xff]  ;;  %v1061_v2 = vmov 0.0   ;;  %v344_v6 = vlaneseq }
  0x38   : > { %362 = vrot.lane.b32.xlu1 %v1226_v0, %s1055_s24  ;;  %340 = vrot.lane.b32.xlu0 %v1226_v0, %s1056_s26  ;;  %s1057_s16 = smov 15   ;;  %s1058_s12 = smov 1   ;;  %v1062_v3 = vmov 0   ;;  %v577_v4 = vld [vmem:[%s1559_s3] sm:$0xff]  ;;  %vm502_vm8 = vcmask 588800  }
  0x39   : > { %s1059_s23 = smov 127   ;;  %s1060_s19 = smov 113   ;;  %570 = vmatprep.mubr.f32.mxu0 %v1061_v2  ;;  %727 = vmatprep.mubr.f32.mxu1 %v1061_v2  ;;  %v585_v5 = vld [vmem:[%s1560_s4] sm:$0xff]  ;;  %v351_v7 = vshrl.u32 %v344_v6, 7  ;;  %v1268_v8 = vand.u32 127, %v344_v6 }
  0x3a   : > { %954 = vset.pattern.permute.xlu0 %v1062_v3  ;;  %955 = vset.pattern.permute.xlu1 %v1062_v3  ;;  %s1567_s25 = smov 112   ;;  %s1569_s15 = smov 111   ;;  %v850_v11 = vld [vmem:[%s1556_s0 + $0x1] ss:$8 sm:$0x3] }
  0x3b   : > { %v1270_v9 = vsub.s32 0, %v351_v7  ;;  %v1272_v10 = vsub.s32 1, %v351_v7  ;;  %v324_v12 = vld [vmem:[%s1556_s0] ss:$8 sm:$0x3]  ;;  %vm366_vm0 = vcmp.lt.s32.totalorder %v1268_v8, 16 }
  0x3c   : > { %364 = vrot.lane.b32.xlu1 %v1232_v1, %s1055_s24  ;;  %342 = vrot.lane.b32.xlu0 %v1232_v1, %s1056_s26  ;;  %vm346_vm1 = vcmp.lt.s32.totalorder %v1268_v8, 17  ;;  %v851_v29 = vld [vmem:[%s1556_s0 + $0x2] ss:$8 sm:$0x3]  ;;  %vm386_vm2 = vcmp.lt.s32.totalorder %v1268_v8, 15  ;;  %vm406_vm3 = vcmp.lt.s32.totalorder %v1268_v8, 1 }
  0x3d   : > { %v1283_v15 = vrot.slane %v850_v11, %v1270_v9  ;;  %v1286_v16 = vrot.slane %v324_v12, %v1270_v9  ;;  %v1289_v17 = vrot.slane %v324_v12, %v1272_v10  ;;  %v1292_v18 = vrot.slane %v850_v11, %v1272_v10  ;;  %v852_v30 = vld [vmem:[%s1556_s0 + $0x3] ss:$8 sm:$0x3]  ;;  %v853_v39 = vld [vmem:[%s1556_s0 + $0x5] ss:$8 sm:$0x3] }
  0x3e   : > { %v1315_v35 = vrot.slane %v851_v29, %v1270_v9  ;;  %v1318_v36 = vrot.slane %v851_v29, %v1272_v10  ;;  %v1321_v37 = vrot.slane %v852_v30, %v1270_v9  ;;  %v1324_v38 = vrot.slane %v852_v30, %v1272_v10  ;;  %v854_v60 = vld [vmem:[%s1556_s0 + $0x6] ss:$8 sm:$0x3]  ;;  %v855_v61 = vld [vmem:[%s1556_s0 + $0x7] ss:$8 sm:$0x3] }
  0x3f   : > { %vm426_vm4 = vcmp.lt.s32.totalorder %v1268_v8, 127  ;;  %v1339_v46 = vrot.slane %v853_v39, %v1270_v9  ;;  %v1342_v47 = vrot.slane %v853_v39, %v1272_v10  ;;  %vm446_vm5 = vcmp.lt.s32.totalorder %v1268_v8, 113  ;;  %v856_v11 = vld [vmem:[%s1556_s0 + $0x10] ss:$8 sm:$0x3]  ;;  %s865_s20 = sshll.u32 %s1132_s9, 8 }
  0x40   : > { %384 = vrot.lane.b32.xlu1 %v1232_v1, %s1057_s16  ;;  %382 = vrot.lane.b32.xlu0 %v1226_v0, %s1057_s16  ;;  %vm466_vm6 = vcmp.lt.s32.totalorder %v1268_v8, 112  ;;  %v1371_v6 = vrot.slane %v855_v61, %v1270_v9  ;;  %v1374_v7 = vrot.slane %v855_v61, %v1272_v10  ;;  %vm486_vm7 = vcmp.lt.s32.totalorder %v1268_v8, 111  ;;  %s1580_s22 = sshll.u32 %s1216_s13, 4  ;;  %s757_s9 = scalar_lea.sflag [#allocation4], %s1216_s13 }
  0x41   : > { %s321_s21 = scalar_lea.vmem [#allocation5], %s1580_s22  ;;  %p1581_p11 = scmp.ne.s32.totalorder %s1573_s17, 0 }
  0x44   : > { %404 = vrot.lane.b32.xlu1 %v1232_v1, %s1058_s12  ;;  %402 = vrot.lane.b32.xlu0 %v1226_v0, %s1058_s12 }
  0x48   : > { %424 = vrot.lane.b32.xlu1 %v1232_v1, %s1059_s23  ;;  %422 = vrot.lane.b32.xlu0 %v1226_v0, %s1059_s23 }
  0x4c   : > { %444 = vrot.lane.b32.xlu1 %v1232_v1, %s1060_s19  ;;  %442 = vrot.lane.b32.xlu0 %v1226_v0, %s1060_s19 }
  0x50   : > { %464 = vrot.lane.b32.xlu1 %v1232_v1, %s1567_s25  ;;  %462 = vrot.lane.b32.xlu0 %v1226_v0, %s1567_s25  ;;  %s771_s25 = sshll.u32 %s321_s21, 4  ;;  %s1514_s25 = int_to_ptr.vmem [resolvable:$true] %s771_s25 }
  0x54   : > { %484 = vrot.lane.b32.xlu1 %v1232_v1, %s1569_s15  ;;  %482 = vrot.lane.b32.xlu0 %v1226_v0, %s1569_s15 }
  0x58   : > { %580 = vperm.xlu0 %954, %v577_v4   ;;  %588 = vperm.xlu1 %955, %v585_v5   ;;  %v1364_v4 = vrot.slane %v854_v60, %v1270_v9  ;;  %v1367_v5 = vrot.slane %v854_v60, %v1272_v10 }
  0xaa   : > { %v363_v13 = vpop.permute.xlu1 %362  ;;  %v341_v14 = vpop.permute.xlu0 %340 }
  0xae   : > { %v365_v19 = vpop.permute.xlu1 %364  ;;  %v343_v20 = vpop.permute.xlu0 %342 }
  0xaf   : > { %v367_v21 = vsel %vm366_vm0, %v363_v13, %v365_v19  ;;  %v368_v22 = vsel %vm366_vm0, %v365_v19, %v363_v13  ;;  %v347_v23 = vsel %vm346_vm1, %v341_v14, %v343_v20  ;;  %v348_v24 = vsel %vm346_vm1, %v343_v20, %v341_v14 }
  0xb0   : > { %v380_v25 = vmul.f32 %v1283_v15, %v368_v22  ;;  %v360_v26 = vmul.f32 %v1286_v16, %v348_v24  ;;  %v361_v27 = vmul.f32 %v1289_v17, %v347_v23  ;;  %v381_v28 = vmul.f32 %v1292_v18, %v367_v21 }
  0xb1   : > { %v1389_v22 = vrot.slane %v856_v11, %v1272_v10 }
  0xb2   : > { %v385_v31 = vpop.permute.xlu1 %384  ;;  %v383_v32 = vpop.permute.xlu0 %382  ;;  %v866_v33 = vpack.c.bf16 %v381_v28, %v361_v27  ;;  %v868_v34 = vpack.c.bf16 %v380_v25, %v360_v26  ;;  %v1396_v27 = vrot.slane %v856_v11, %v1270_v9  ;;  %v339_v9 = vld [vmem:[%s1558_s2] sm:$0xff] }
  0xb3   : > { %v387_v40 = vsel %vm386_vm2, %v383_v32, %v385_v31  ;;  %v388_v41 = vsel %vm386_vm2, %v385_v31, %v383_v32 }
  0xb4   : > { %867 = vmatprep.subr.bf16.mxu0 %v866_v33  ;;  %v400_v48 = vmul.f32 %v1315_v35, %v388_v41  ;;  %v401_v49 = vmul.f32 %v1318_v36, %v387_v40 }
  0xb5   : > { %869 = vmatpush1.bf16.msra.mxu0 %v868_v34 }
  0xb6   : > { %v405_v42 = vpop.permute.xlu1 %404  ;;  %v403_v43 = vpop.permute.xlu0 %402 }
  0xb7   : > { %v407_v44 = vsel %vm406_vm3, %v403_v43, %v405_v42  ;;  %v408_v45 = vsel %vm406_vm3, %v405_v42, %v403_v43 }
  0xb8   : > { %v420_v50 = vmul.f32 %v1321_v37, %v408_v45  ;;  %v421_v51 = vmul.f32 %v1324_v38, %v407_v44 }
  0xba   : > { %v425_v52 = vpop.permute.xlu1 %424  ;;  %v423_v53 = vpop.permute.xlu0 %422  ;;  %v870_v54 = vpack.c.bf16 %v421_v51, %v401_v49  ;;  %v872_v55 = vpack.c.bf16 %v420_v50, %v400_v48  ;;  %v734_v51 = vld [vmem:[%s1562_s6] sm:$0xff] }
  0xbb   : > { %v427_v56 = vsel %vm426_vm4, %v423_v53, %v425_v52  ;;  %v428_v57 = vsel %vm426_vm4, %v425_v52, %v423_v53  ;;  %v742_v52 = vld [vmem:[%s1563_s7] sm:$0xff] }
  0xbc   : > { %v440_v58 = vmul.f32 %v1339_v46, %v427_v56  ;;  %v441_v59 = vmul.f32 %v1342_v47, %v428_v57  ;;  %871 = vmatprep.subr.bf16.mxu0 %v870_v54 }
  0xbd   : > { %873 = vmatpush1.bf16.msra.mxu0 %v872_v55 }
  0xbe   : > { %v445_v62 = vpop.permute.xlu1 %444  ;;  %v443_v63 = vpop.permute.xlu0 %442  ;;  %v874_v2 = vpack.c.bf16 %v441_v59, %v1232_v1  ;;  %v876_v3 = vpack.c.bf16 %v440_v58, %v1226_v0 }
  0xbf   : > { %v447_v12 = vsel %vm446_vm5, %v443_v63, %v445_v62  ;;  %v448_v13 = vsel %vm446_vm5, %v445_v62, %v443_v63 }
  0xc0   : > { %875 = vmatprep.subr.bf16.mxu0 %v874_v2  ;;  %v460_v23 = vmul.f32 %v1364_v4, %v447_v12  ;;  %v461_v24 = vmul.f32 %v1367_v5, %v448_v13 }
  0xc1   : > { %877 = vmatpush1.bf16.msra.mxu0 %v876_v3 }
  0xc2   : > { %v465_v14 = vpop.permute.xlu1 %464  ;;  %v463_v19 = vpop.permute.xlu0 %462 }
  0xc3   : > { %v467_v20 = vsel %vm466_vm6, %v463_v19, %v465_v14  ;;  %v468_v21 = vsel %vm466_vm6, %v465_v14, %v463_v19 }
  0xc4   : > { %v480_v25 = vmul.f32 %v1371_v6, %v467_v20  ;;  %v481_v26 = vmul.f32 %v1374_v7, %v468_v21 }
  0xc6   : > { %v485_v28 = vpop.permute.xlu1 %484  ;;  %v878_v29 = vpack.c.bf16 %v481_v26, %v461_v24  ;;  %v483_v30 = vpop.permute.xlu0 %482  ;;  %v880_v31 = vpack.c.bf16 %v480_v25, %v460_v23 }
  0xc7   : > { %v487_v32 = vsel %vm486_vm7, %v483_v30, %v485_v28  ;;  %v488_v10 = vsel %vm486_vm7, %v485_v28, %v483_v30 }
  0xc8   : > { %879 = vmatprep.subr.bf16.mxu0 %v878_v29  ;;  %v501_v33 = vmul.f32 %v1389_v22, %v488_v10  ;;  %v500_v34 = vmul.f32 %v1396_v27, %v487_v32 }
  0xc9   : > { %881 = vmatpush1.bf16.msra.mxu0 %v880_v31 }
  0xca   : > { %522 = vmatprep.subr.mxu0 %v501_v33 }
  0xcd   : > { %523 = vmatpush1.msra.mxu0 %v500_v34 }
  0xce   : > { %857 = vmatmul.mubr.msk.f32.vlgmr.msra.gmra.mrb[0].mxu0 %vm502_vm8, %v339_v9 }
  0xd7   : > { %v581_v39 = vpop.permute.xlu0 %580  ;;  %v589_v41 = vpop.permute.xlu1 %588 }
 0x1a1   : > { %v572_v40 = vpop.f32.mrb[0].mxu0 }
 0x1a2   : > { %v583_v42 = vmul.f32 %v581_v39, %v572_v40  ;;  %v574_v43 = vpop.f32.mrb[1].mxu0 }
 0x1a3   : > { %v584_v44 = vmul.f32 %v581_v39, %v574_v43 }
 0x1a4   : > { %v591_v45 = vadd.f32 %v589_v41, %v583_v42 }
 0x1a5   : > { %v592_v48 = vadd.f32 %v589_v41, %v584_v44 }
 0x1a6   : > { %v1408_v49 = vmax.f32 %v591_v45, 0.0 }
 0x1a7   : > { %v1410_v50 = vmax.f32 %v592_v48, 0.0 }
 0x1a8   : > { %596 = vrot.lane.b32.xlu1 %v1408_v49, %s1056_s26 }
 0x1a9   : > { %598 = vrot.lane.b32.xlu0 %v1410_v50, %s1056_s26  ;;  %s1579_s26 = smov 111  }
 0x1ac   : > { %604 = vrot.lane.b32.xlu1 %v1408_v49, %s1055_s24 }
 0x1ad   : > { %606 = vrot.lane.b32.xlu0 %v1410_v50, %s1055_s24  ;;  %s1578_s24 = smov 112  }
 0x1b0   : > { %612 = vrot.lane.b32.xlu1 %v1408_v49, %s1057_s16 }
 0x1b1   : > { %614 = vrot.lane.b32.xlu0 %v1410_v50, %s1057_s16  ;;  %s1512_s16 = scalar_lea.hbm %s1564_s8, %s865_s20 }
 0x1b4   : > { %620 = vrot.lane.b32.xlu1 %v1408_v49, %s1058_s12 }
 0x1b5   : > { %622 = vrot.lane.b32.xlu0 %v1410_v50, %s1058_s12  ;;  %s986_s12 = scalar_lea.vmem %s1514_s25, 256 }
 0x1b6   : > { %p987_p6 = scmp.ne.s32.totalorder %s1514_s25, %s986_s12 }
 0x1b8   : > { %628 = vrot.lane.b32.xlu1 %v1408_v49, %s1059_s23  ;;  %p988_p12 = pnand %p987_p6, %p1581_p11 }
 0x1b9   : > { %630 = vrot.lane.b32.xlu0 %v1410_v50, %s1059_s23  ;;  %s1065_s23 = smov [#allocation5]  }
 0x1ba   : > { %p989_p13 = pneg %p988_p12  ;;  %s990_s15 = sshll.u32 %s1065_s23, 4  ;;  %s991_s15 = int_to_ptr.vmem [resolvable:$false] %s990_s15 }
 0x1bb   : > { %p993_p7 = scmp.lt.s32.totalorder %s1514_s25, %s991_s15 }
 0x1bc   : > { %636 = vrot.lane.b32.xlu1 %v1408_v49, %s1060_s19 }
 0x1bd   : > { %638 = vrot.lane.b32.xlu0 %v1410_v50, %s1060_s19  ;;  %s992_s19 = scalar_lea.vmem %s991_s15, 512 }
 0x1be   : > { %p994_p10 = scmp.lt.s32.totalorder %s992_s19, %s986_s12 }
 0x1c0   : > { %644 = vrot.lane.b32.xlu1 %v1408_v49, %s1578_s24  ;;  %p995_p2 = por %p994_p10, %p993_p7 }
 0x1c1   : > { %646 = vrot.lane.b32.xlu0 %v1410_v50, %s1578_s24 }
 0x1c2   : > { %p996_p4 = pnand %p995_p2, %p989_p13 }
 0x1c4   : > { %652 = vrot.lane.b32.xlu1 %v1408_v49, %s1579_s26 }
 0x1c5   : > { %654 = vrot.lane.b32.xlu0 %v1410_v50, %s1579_s26 }
 0x1c8   : > { %737 = vperm.xlu1 %955, %v734_v51  }
 0x1c9   : > { %745 = vperm.xlu0 %954, %v742_v52  }
 0x21a   : > { %v597_v53 = vpop.permute.xlu1 %596 }
 0x21b   : > { %v599_v54 = vpop.permute.xlu0 %598 }
 0x21c   : > { %v600_v55 = vsel %vm346_vm1, %v597_v53, %v599_v54  ;;  %v601_v56 = vsel %vm346_vm1, %v599_v54, %v597_v53 }
 0x21d   : > { %v602_v61 = vmul.f32 %v601_v56, %v1286_v16  ;;  %v603_v63 = vmul.f32 %v600_v55, %v1289_v17 }
 0x21e   : > { %v605_v57 = vpop.permute.xlu1 %604 }
 0x21f   : > { %v607_v58 = vpop.permute.xlu0 %606 }
 0x220   : > { %v608_v59 = vsel %vm366_vm0, %v605_v57, %v607_v58  ;;  %v609_v60 = vsel %vm366_vm0, %v607_v58, %v605_v57 }
 0x221   : > { %v610_v62 = vmul.f32 %v609_v60, %v1283_v15  ;;  %v611_v2 = vmul.f32 %v608_v59, %v1292_v18 }
 0x222   : > { %v613_v3 = vpop.permute.xlu1 %612 }
 0x223   : > { %v615_v11 = vpop.permute.xlu0 %614  ;;  %v882_v12 = vpack.c.bf16 %v611_v2, %v603_v63  ;;  %v884_v13 = vpack.c.bf16 %v610_v62, %v602_v61 }
 0x224   : > { %v616_v14 = vsel %vm386_vm2, %v613_v3, %v615_v11  ;;  %v617_v19 = vsel %vm386_vm2, %v615_v11, %v613_v3 }
 0x225   : > { %883 = vmatprep.subr.bf16.mxu1 %v882_v12  ;;  %v618_v18 = vmul.f32 %v617_v19, %v1315_v35  ;;  %v619_v21 = vmul.f32 %v616_v14, %v1318_v36 }
 0x226   : > { %885 = vmatpush1.bf16.msra.mxu1 %v884_v13  ;;  %v621_v20 = vpop.permute.xlu1 %620 }
 0x227   : > { %v623_v16 = vpop.permute.xlu0 %622 }
 0x228   : > { %v624_v15 = vsel %vm406_vm3, %v621_v20, %v623_v16  ;;  %v625_v17 = vsel %vm406_vm3, %v623_v16, %v621_v20 }
 0x229   : > { %v626_v23 = vmul.f32 %v625_v17, %v1321_v37  ;;  %v627_v24 = vmul.f32 %v624_v15, %v1324_v38 }
 0x22a   : > { %v629_v25 = vpop.permute.xlu1 %628 }
 0x22b   : > { %v631_v26 = vpop.permute.xlu0 %630  ;;  %v886_v28 = vpack.c.bf16 %v627_v24, %v619_v21  ;;  %v888_v29 = vpack.c.bf16 %v626_v23, %v618_v18 }
 0x22c   : > { %v632_v30 = vsel %vm426_vm4, %v629_v25, %v631_v26  ;;  %v633_v31 = vsel %vm426_vm4, %v631_v26, %v629_v25 }
 0x22d   : > { %v634_v32 = vmul.f32 %v632_v30, %v1339_v46  ;;  %v635_v35 = vmul.f32 %v633_v31, %v1342_v47  ;;  %887 = vmatprep.subr.bf16.mxu1 %v886_v28 }
 0x22e   : > { %889 = vmatpush1.bf16.msra.mxu1 %v888_v29  ;;  %v637_v36 = vpop.permute.xlu1 %636 }
 0x22f   : > { %v639_v37 = vpop.permute.xlu0 %638  ;;  %v890_v38 = vpack.c.bf16 %v635_v35, %v1410_v50  ;;  %v892_v10 = vpack.c.bf16 %v634_v32, %v1408_v49 }
 0x230   : > { %v640_v33 = vsel %vm446_vm5, %v637_v36, %v639_v37  ;;  %v641_v34 = vsel %vm446_vm5, %v639_v37, %v637_v36 }
 0x231   : > { %891 = vmatprep.subr.bf16.mxu1 %v890_v38  ;;  %v642_v40 = vmul.f32 %v640_v33, %v1364_v4  ;;  %v643_v41 = vmul.f32 %v641_v34, %v1367_v5  ;;  %v595_v5 = vld [vmem:[%s1561_s5] sm:$0xff] }
 0x232   : > { %893 = vmatpush1.bf16.msra.mxu1 %v892_v10  ;;  %v645_v9 = vpop.permute.xlu1 %644 }
 0x233   : > { %v647_v46 = vpop.permute.xlu0 %646 }
 0x234   : > { %v648_v47 = vsel %vm466_vm6, %v645_v9, %v647_v46  ;;  %v649_v39 = vsel %vm466_vm6, %v647_v46, %v645_v9 }
 0x235   : > { %v650_v42 = vmul.f32 %v648_v47, %v1371_v6  ;;  %v651_v43 = vmul.f32 %v649_v39, %v1374_v7 }
 0x236   : > { %v653_v44 = vpop.permute.xlu1 %652 }
 0x237   : > { %v655_v45 = vpop.permute.xlu0 %654  ;;  %v894_v48 = vpack.c.bf16 %v651_v43, %v643_v41  ;;  %v896_v49 = vpack.c.bf16 %v650_v42, %v642_v40 }
 0x238   : > { %v657_v50 = vsel %vm486_vm7, %v655_v45, %v653_v44  ;;  %v656_v51 = vsel %vm486_vm7, %v653_v44, %v655_v45 }
 0x239   : > { %v659_v52 = vmul.f32 %v657_v50, %v1389_v22  ;;  %895 = vmatprep.subr.bf16.mxu1 %v894_v48  ;;  %v658_v4 = vmul.f32 %v656_v51, %v1396_v27 }
 0x23a   : > { %897 = vmatpush1.bf16.msra.mxu1 %v896_v49 }
 0x23b   : > { %679 = vmatprep.subr.mxu1 %v659_v52 }
 0x23e   : > { %680 = vmatpush1.msra.mxu1 %v658_v4 }
 0x23f   : > { %858 = vmatmul.mubr.msk.f32.vlgmr.msra.gmra.mrb[0].mxu1 %vm502_vm8, %v595_v5 }
 0x247   : > { %v738_v6 = vpop.permute.xlu1 %737 }
 0x248   : > { %v746_v22 = vpop.permute.xlu0 %745 }
 0x312   : > { %v729_v7 = vpop.f32.mrb[0].mxu1 }
 0x313   : > { %v740_v8 = vmul.f32 %v738_v6, %v729_v7  ;;  %v731_v53 = vpop.f32.mrb[1].mxu1 }
 0x314   : > { %v741_v54 = vmul.f32 %v738_v6, %v731_v53 }
 0x315   : > { %v748_v55 = vadd.f32 %v746_v22, %v740_v8 }
 0x316   : > { %v749_v56 = vadd.f32 %v746_v22, %v741_v54 }
 0x317   : > { %v750_v57 = vadd.f32 %v748_v55, %v1226_v0 }
 0x318   : > { %v751_v27 = vadd.f32 %v749_v56, %v1232_v1 }
 0x319   : > { %v752_v58 = vmax.f32 %v750_v57, 0.0 }
 0x31a   : > { %v753_v59 = vmax.f32 %v751_v27, 0.0 }
 0x31b   : > { %754 = vst [vmem:[%s321_s21] sm:$0xff] %v752_v58 }
 0x31c   : > { %755 = vst [vmem:[%s321_s21 + $0x8] sm:$0xff] %v753_v59 }
 0x31d   : > { %999 = shalt.err (!%p996_p4)
}
 0x31e   : > { %s1000_s13 = scalar_lea.hbm %s1512_s16, 256  ;;  %s1004_s22 = scalar_lea.hbm %s1564_s8, 512 }
 0x31f   : > { %p1001_p5 = scmp.ne.s32.totalorder %s1512_s16, %s1000_s13  ;;  %p1005_p0 = scmp.lt.u32.totalorder %s1512_s16, %s1564_s8 }
 0x320   : > { %p1006_p1 = scmp.lt.u32.totalorder %s1004_s22, %s1000_s13  ;;  %p1008_p6 = scmp.lt.u32.totalorder %s1000_s13, %s1512_s16 }
 0x321   : > { %p1002_p8 = pnand %p1001_p5, %p1581_p11 }
 0x322   : > { %p1007_p3 = por %p1006_p1, %p1005_p0 }
 0x323   : > { %p1003_p9 = pneg %p1002_p8 }
 0x324   : > { %p1009_p12 = por %p1008_p6, %p1007_p3 }
 0x326   : > { %p1010_p13 = pnand %p1009_p12, %p1003_p9 }
 0x328   : > { %1013 = shalt.err (!%p1010_p13)
}
 0x329   : > { %900 = dma.vmem_to_hbm [thread:$0]  (%p1581_p11), %s1514_s25, 256, %s1512_s16, %s757_s9  }
 0x32a PF: > { %s783_s26 = sand.u32 1, %s1040_s27   ;;  %p1582_p7 = scmp.ne.s32.totalorder %s1574_s18, 0 }
 0x32b   : > { %p1583_p10 = scmp.ge.s32.totalorder %s1052_s30, 2  ;;  %s784_s12 = scalar_lea.sflag [#allocation4], %s783_s26 }
 0x32d   : > { %p907_p2 = pnand %p1583_p10, %p1582_p7 }
 0x32f   : > { %1035 = dma.done.wait (!%p907_p2), %s784_s12, 256  }
 0x330   : > { %1037 = vsyncadd (!%p907_p2), %s784_s12, 4294967040  ;;  %p21_p4 = scmp.ge.s32.totalorder %s1136_s11, 4   ;;  %s1584_s27 = smov %s1044_s28 }
 0x331   : > { %s1585_s28 = smov %s1048_s29  ;;  %s1586_s29 = smov %s1148_s14 }
 0x332   : > { %s1587_s30 = smov %s1136_s11  ;;  %23 = sbr.rel (!%p21_p4) target bundleno = 5 (0x5), region = 104 }
 0x339   :  { %789 = vsyncpa [#allocation3], 1 }
 0x33a   :  { %791 = vsyncpa [#allocation3 + $0x1], 1 }
 0x33b   :  { %792 = vsyncpa [#allocation4], 1 }
 0x33c   :  { %794 = vsyncpa [#allocation4 + $0x1], 1 }

</bundles_post_ra>
